<compile_context>
chip_gen: v7x
topology: tpu7x:2x2x1
jax: 0.10.0
libtpu: 0.0.40
codegen_flags: <defaults>
</compile_context>

<pallas_src>
import jax
import jax.numpy as jnp
from jax import lax
from jax.experimental import pallas as pl
from jax.experimental.pallas import tpu as pltpu

# ----------------------------- sizes ---------------------------------------
B, S = 2, 8          # batch, sequence
H = 32               # hidden_size
I = 64               # intermediate_size
ADD = 5              # max_add_neuron_num
IP = 128             # edited intermediate dim (I+ADD=69) zero-padded to lane width
V = 128              # vocab_size
N = B * S
IP2 = 2 * IP


# --------------------------- fused Pallas kernel -----------------------------
def editor_fused_kernel(ids_ref, labels_ref, a_ref, b_ref, wdlm_ref,
                        logits_ref, loss_ref):
    """embed+gate+up (1 matmul) -> SiLU*up -> down+lm_head (1 matmul) -> shifted CE."""
    ids = ids_ref[...]                                                 # (N,1) int32
    vocab_iota = lax.broadcasted_iota(jnp.int32, (N, V), 1)
    onehot = (vocab_iota == ids).astype(jnp.bfloat16)                  # (N,V), exact in bf16

    # ---- fused embedding + edited gate|up projection ----
    gu = jnp.dot(onehot, a_ref[...],
                 preferred_element_type=jnp.float32) + b_ref[...]      # (N, 2*IP) f32
    g = gu[:, :IP]
    u = gu[:, IP:]
    act = (g * jax.nn.sigmoid(g)) * u                                  # f32; pad lanes stay 0

    # ---- fused edited down_proj + lm_head ----
    logits = jnp.dot(act.astype(jnp.bfloat16), wdlm_ref[...],
                     preferred_element_type=jnp.float32)               # (N, V) f32
    logits_ref[...] = logits

    # ---- in-kernel label shift: shifted[n] = labels[n+1] if n%S != S-1 else 0 ----
    lab = jnp.broadcast_to(labels_ref[...], (N, N))                    # (N,N) int32
    row = lax.broadcasted_iota(jnp.int32, (N, N), 0)
    col = lax.broadcasted_iota(jnp.int32, (N, N), 1)
    sel = (col == row + 1) & ((row % S) != (S - 1))
    shifted = jnp.sum(jnp.where(sel, lab, 0), axis=1, keepdims=True)   # (N,1) int32

    # ---- cross-entropy, ignore_index = 0 ----
    m = jnp.max(logits, axis=-1, keepdims=True)
    lse = m + jnp.log(jnp.sum(jnp.exp(logits - m), axis=-1, keepdims=True))   # (N,1)
    tgt = jnp.sum(jnp.where(vocab_iota == shifted, logits, 0.0),
                  axis=-1, keepdims=True)                              # (N,1)
    valid = (shifted != 0).astype(jnp.float32)
    ce_sum = jnp.sum((lse - tgt) * valid)
    cnt = jnp.sum(valid)
    # PyTorch CE would NaN if every label is ignored; clamp denominator (no-op when cnt>0)
    loss_ref[0, 0] = ce_sum / jnp.maximum(cnt, 1.0)


def editor_pallas(ids_col, labels_row, w):
    vmem = pl.BlockSpec(memory_space=pltpu.MemorySpace.VMEM)
    return pl.pallas_call(
        editor_fused_kernel,
        out_shape=(jax.ShapeDtypeStruct((N, V), jnp.float32),
                   jax.ShapeDtypeStruct((1, 1), jnp.float32)),
        in_specs=[vmem, vmem, vmem, vmem, vmem],
        out_specs=(vmem, pl.BlockSpec(memory_space=pltpu.MemorySpace.SMEM)),
    )(ids_col, labels_row, w["A"], w["b"], w["wdlm"])


# ------------------------------ params / prep --------------------------------
def init_params(key):
    ks = jax.random.split(key, 10)
    s = 0.05
    return {
        "embed":        jax.random.normal(ks[0], (V, H), jnp.float32) * s,
        "gate_w":       jax.random.normal(ks[1], (I, H), jnp.float32) * s,   # gate_proj.weight
        "up_w":         jax.random.normal(ks[2], (I, H), jnp.float32) * s,   # up_proj.weight
        "down_w":       jax.random.normal(ks[3], (H, I), jnp.float32) * s,   # down_proj.weight
        # ModifyLinearOutput_single patches (edit_type='output'): extra rows + bias
        "gate_extra_w": jax.random.normal(ks[4], (ADD, H), jnp.float32) * s,
        "gate_extra_b": jax.random.normal(ks[5], (ADD,), jnp.float32) * s,
        "up_extra_w":   jax.random.normal(ks[6], (ADD, H), jnp.float32) * s,
        "up_extra_b":   jax.random.normal(ks[7], (ADD,), jnp.float32) * s,
        # ModifyLinearInput_single patch (edit_type='input'): extra columns (amplify=False)
        "down_extra":   jax.random.normal(ks[8], (H, ADD), jnp.float32) * s,
        "lm_head":      jax.random.normal(ks[9], (V, H), jnp.float32) * s,
    }


def prepare_weights(p):
    """Done ONCE: apply the edits (concat), transpose, zero-pad 69->128, then fold
    embed->gate|up and down->lm_head into two bf16 tables."""
    # ModifyLinearOutput_single.get_modified_weight_bias (gate/up): cat rows, cat bias
    wgT = jnp.zeros((H, IP), jnp.float32)
    wgT = wgT.at[:, :I].set(p["gate_w"].T).at[:, I:I + ADD].set(p["gate_extra_w"].T)
    wuT = jnp.zeros((H, IP), jnp.float32)
    wuT = wuT.at[:, :I].set(p["up_w"].T).at[:, I:I + ADD].set(p["up_extra_w"].T)
    bg = jnp.zeros((IP,), jnp.float32).at[I:I + ADD].set(p["gate_extra_b"])
    bu = jnp.zeros((IP,), jnp.float32).at[I:I + ADD].set(p["up_extra_b"])
    # ModifyLinearInput_single.get_modified_weight_bias (down): cat columns, zero bias (dropped)
    wdT = jnp.zeros((IP, H), jnp.float32)
    wdT = wdT.at[:I, :].set(p["down_w"].T).at[I:I + ADD, :].set(p["down_extra"].T)

    # Fold 1: embedding into gate|up -> A (V, 2*IP), b (1, 2*IP)
    A = jnp.concatenate([p["embed"] @ wgT, p["embed"] @ wuT], axis=1)
    b = jnp.concatenate([bg, bu]).reshape(1, IP2)
    # Fold 2: down_proj into lm_head -> wdlm (IP, V)
    wdlm = wdT @ p["lm_head"].T
    return {"A": A.astype(jnp.bfloat16), "b": b, "wdlm": wdlm.astype(jnp.bfloat16)}


# ------------------------------ forward (glue) --------------------------------
@jax.jit
def editor_forward(prepped, input_ids, attention_mask, labels):
    # TODO(synk): attention_mask is accepted for API parity but the synthetic
    # model has no attention, so it is unused (as is Editor's inactive dropout path).
    del attention_mask
    ids_col = input_ids.reshape(N, 1).astype(jnp.int32)       # contiguous reshape (free)
    labels_row = labels.reshape(1, N).astype(jnp.int32)       # raw labels; shift done in-kernel
    logits_flat, loss = editor_pallas(ids_col, labels_row, prepped)
    logits = logits_flat.reshape(B, S, V)                     # == PyTorch `logits`
    return {"logtis": logits, "loss": loss[0, 0]}             # key typo kept for API parity


# ------------------------------ reference -----------------------------------
def editor_forward_ref(params, input_ids, labels):
    W_gate = jnp.concatenate([params["gate_w"], params["gate_extra_w"]], axis=0)
    b_gate = jnp.concatenate([jnp.zeros((I,), jnp.float32), params["gate_extra_b"]])
    W_up = jnp.concatenate([params["up_w"], params["up_extra_w"]], axis=0)
    b_up = jnp.concatenate([jnp.zeros((I,), jnp.float32), params["up_extra_b"]])
    W_down = jnp.concatenate([params["down_w"], params["down_extra"]], axis=1)

    x = jnp.take(params["embed"], input_ids, axis=0)                        # [B,S,H]
    g = x @ W_gate.T + b_gate
    u = x @ W_up.T + b_up
    act = (g * jax.nn.sigmoid(g)) * u
    h = act @ W_down.T
    logits = h @ params["lm_head"].T                                        # [B,S,V]
    out = logits[:, :-1, :].reshape(-1, V)
    lab = labels[:, 1:].reshape(-1)
    lse = jax.nn.logsumexp(out, axis=-1)
    tgt = jnp.take_along_axis(out, lab[:, None], axis=-1)[:, 0]
    valid = (lab != 0).astype(jnp.float32)
    loss = jnp.sum((lse - tgt) * valid) / jnp.sum(valid)
    return logits, loss


# --------------------------------- main --------------------------------------
if __name__ == "__main__":
    key = jax.random.PRNGKey(0)
    k_par, k_ids, k_lab = jax.random.split(key, 3)
    params = init_params(k_par)
    prepped = prepare_weights(params)            # one-time: edit-concat + transpose + pad + folds
    prepped = jax.block_until_ready(prepped)

    input_ids = jax.random.randint(k_ids, (B, S), 0, V, dtype=jnp.int32)
    attention_mask = jnp.ones((B, S), jnp.int32)
    labels = jax.random.randint(k_lab, (B, S), 0, V, dtype=jnp.int32)

    res = editor_forward(prepped, input_ids, attention_mask, labels)
    jax.block_until_ready(res)

    ref_logits, ref_loss = editor_forward_ref(params, input_ids, labels)
    assert res["logtis"].shape == (B, S, V)
    assert jnp.allclose(res["logtis"], ref_logits, rtol=5e-2, atol=5e-3), "logits mismatch"
    assert jnp.allclose(res["loss"], ref_loss, rtol=5e-2, atol=5e-3), "loss mismatch"

    print("KERNEL_OK")
</pallas_src>

<mosaic_0001>
module attributes {stable_mosaic.version = 11 : i64} {
  func.func @editor_fused_kernel(%arg0: memref<16x1xi32, #tpu.memory_space<vmem>>, %arg1: memref<1x16xi32, #tpu.memory_space<vmem>>, %arg2: memref<128x256xbf16, #tpu.memory_space<vmem>>, %arg3: memref<1x256xf32, #tpu.memory_space<vmem>>, %arg4: memref<128x128xbf16, #tpu.memory_space<vmem>>, %arg5: memref<16x128xf32, #tpu.memory_space<vmem>>, %arg6: memref<1x1xf32, #tpu.memory_space<smem>>) attributes {dimension_semantics = [], scalar_prefetch = 0 : i64, scratch_operands = 0 : i64, tpu.core_type = #tpu.core_type<tc>} {
    %c0 = arith.constant 0 : index
    %c0_0 = arith.constant 0 : index
    %0 = vector.load %arg0[%c0, %c0_0] : memref<16x1xi32, #tpu.memory_space<vmem>>, vector<16x1xi32>
    %1 = tpu.iota {dimensions = array<i32: 1>} : vector<16x128xi32>
    %2 = vector.broadcast %0 : vector<16x1xi32> to vector<16x128xi32>
    %3 = arith.cmpi eq, %1, %2 : vector<16x128xi32>
    %4 = arith.extui %3 : vector<16x128xi1> to vector<16x128xi32>
    %5 = arith.sitofp %4 : vector<16x128xi32> to vector<16x128xf32>
    %6 = arith.truncf %5 : vector<16x128xf32> to vector<16x128xbf16>
    %c0_1 = arith.constant 0 : index
    %c0_2 = arith.constant 0 : index
    %7 = vector.load %arg2[%c0_1, %c0_2] : memref<128x256xbf16, #tpu.memory_space<vmem>>, vector<128x256xbf16>
    %cst = arith.constant dense<0.000000e+00> : vector<16x256xf32>
    %8 = tpu.matmul %6, %7, %cst {dimension_numbers = #tpu.dot_dimension_numbers<[1], [0], [0], [1], [0, 0, 1, 1], [], []>} : vector<16x128xbf16>, vector<128x256xbf16>, vector<16x256xf32> -> vector<16x256xf32>
    %c0_3 = arith.constant 0 : index
    %c0_4 = arith.constant 0 : index
    %9 = vector.load %arg3[%c0_3, %c0_4] : memref<1x256xf32, #tpu.memory_space<vmem>>, vector<1x256xf32>
    %10 = vector.broadcast %9 : vector<1x256xf32> to vector<16x256xf32>
    %11 = arith.addf %8, %10 : vector<16x256xf32>
    %12 = vector.extract_strided_slice %11 {offsets = [0, 0], sizes = [16, 128], strides = [1, 1]} : vector<16x256xf32> to vector<16x128xf32>
    %13 = vector.extract_strided_slice %11 {offsets = [0, 128], sizes = [16, 128], strides = [1, 1]} : vector<16x256xf32> to vector<16x128xf32>
    %14 = arith.negf %12 : vector<16x128xf32>
    %15 = math.exp %14 : vector<16x128xf32>
    %cst_5 = arith.constant 1.000000e+00 : f32
    %16 = vector.broadcast %cst_5 : f32 to vector<16x128xf32>
    %17 = arith.addf %16, %15 : vector<16x128xf32>
    %18 = arith.divf %16, %17 : vector<16x128xf32>
    %19 = arith.mulf %12, %18 : vector<16x128xf32>
    %20 = arith.mulf %19, %13 : vector<16x128xf32>
    %21 = arith.truncf %20 : vector<16x128xf32> to vector<16x128xbf16>
    %c0_6 = arith.constant 0 : index
    %c0_7 = arith.constant 0 : index
    %22 = vector.load %arg4[%c0_6, %c0_7] : memref<128x128xbf16, #tpu.memory_space<vmem>>, vector<128x128xbf16>
    %cst_8 = arith.constant dense<0.000000e+00> : vector<16x128xf32>
    %23 = tpu.matmul %21, %22, %cst_8 {dimension_numbers = #tpu.dot_dimension_numbers<[1], [0], [0], [1], [0, 0, 1, 1], [], []>} : vector<16x128xbf16>, vector<128x128xbf16>, vector<16x128xf32> -> vector<16x128xf32>
    %c0_9 = arith.constant 0 : index
    %c0_10 = arith.constant 0 : index
    %24 = vector.load %arg5[%c0_9, %c0_10] : memref<16x128xf32, #tpu.memory_space<vmem>>, vector<16x128xf32>
    tpu.vector_store %arg5[%c0_9, %c0_10], %23 {strides = array<i32>} : memref<16x128xf32, #tpu.memory_space<vmem>>, vector<16x128xf32>,
    %c0_11 = arith.constant 0 : index
    %c0_12 = arith.constant 0 : index
    %25 = vector.load %arg1[%c0_11, %c0_12] : memref<1x16xi32, #tpu.memory_space<vmem>>, vector<1x16xi32>
    %26 = vector.shape_cast %25 : vector<1x16xi32> to vector<1x16xi32>
    %27 = vector.broadcast %26 : vector<1x16xi32> to vector<16x16xi32>
    %28 = tpu.iota {dimensions = array<i32: 0>} : vector<16x16xi32>
    %29 = tpu.iota {dimensions = array<i32: 1>} : vector<16x16xi32>
    %c1_i32 = arith.constant 1 : i32
    %30 = vector.broadcast %c1_i32 : i32 to vector<16x16xi32>
    %31 = arith.addi %28, %30 : vector<16x16xi32>
    %32 = arith.cmpi eq, %29, %31 : vector<16x16xi32>
    %c8_i32 = arith.constant 8 : i32
    %c0_i32 = arith.constant 0 : i32
    %33 = arith.cmpi eq, %c8_i32, %c0_i32 : i32
    %c1_i32_13 = arith.constant 1 : i32
    %34 = arith.select %33, %c1_i32_13, %c8_i32 : i32
    %35 = vector.broadcast %34 : i32 to vector<16x16xi32>
    %36 = arith.remsi %28, %35 : vector<16x16xi32>
    %c0_i32_14 = arith.constant 0 : i32
    %37 = vector.broadcast %c0_i32_14 : i32 to vector<16x16xi32>
    %38 = arith.cmpi ne, %36, %37 : vector<16x16xi32>
    %c0_i32_15 = arith.constant 0 : i32
    %39 = vector.broadcast %c0_i32_15 : i32 to vector<16x16xi32>
    %40 = arith.cmpi slt, %36, %39 : vector<16x16xi32>
    %c0_i32_16 = arith.constant 0 : i32
    %41 = arith.cmpi slt, %34, %c0_i32_16 : i32
    %42 = vector.broadcast %41 : i1 to vector<16x16xi1>
    %43 = vector.broadcast %42 : vector<16x16xi1> to vector<16x16xi1>
    %44 = arith.xori %40, %43 : vector<16x16xi1>
    %45 = arith.andi %44, %38 : vector<16x16xi1>
    %46 = vector.broadcast %34 : i32 to vector<16x16xi32>
    %47 = arith.addi %36, %46 : vector<16x16xi32>
    %48 = arith.select %45, %47, %36 : vector<16x16xi1>, vector<16x16xi32>
    %c7_i32 = arith.constant 7 : i32
    %49 = vector.broadcast %c7_i32 : i32 to vector<16x16xi32>
    %50 = arith.cmpi ne, %48, %49 : vector<16x16xi32>
    %51 = arith.andi %32, %50 : vector<16x16xi1>
    %c0_i32_17 = arith.constant 0 : i32
    %52 = vector.broadcast %c0_i32_17 : i32 to vector<16x16xi32>
    %53 = arith.select %51, %27, %52 : vector<16x16xi1>, vector<16x16xi32>
    %cst_18 = arith.constant dense<0> : vector<16xi32>
    %54 = vector.multi_reduction <add>, %53, %cst_18 [1] : vector<16x16xi32> to vector<16xi32>
    %55 = vector.shape_cast %54 : vector<16xi32> to vector<16x1xi32>
    %cst_19 = arith.constant dense<0xFF800000> : vector<16xf32>
    %56 = vector.multi_reduction <maximumf>, %23, %cst_19 [1] : vector<16x128xf32> to vector<16xf32>
    %57 = vector.shape_cast %56 : vector<16xf32> to vector<16x1xf32>
    %58 = vector.broadcast %57 : vector<16x1xf32> to vector<16x128xf32>
    %59 = arith.subf %23, %58 : vector<16x128xf32>
    %60 = math.exp %59 : vector<16x128xf32>
    %cst_20 = arith.constant dense<0.000000e+00> : vector<16xf32>
    %61 = vector.multi_reduction <add>, %60, %cst_20 [1] : vector<16x128xf32> to vector<16xf32>
    %62 = vector.shape_cast %61 : vector<16xf32> to vector<16x1xf32>
    %63 = math.log %62 : vector<16x1xf32>
    %64 = arith.addf %57, %63 : vector<16x1xf32>
    %65 = vector.broadcast %55 : vector<16x1xi32> to vector<16x128xi32>
    %66 = arith.cmpi eq, %1, %65 : vector<16x128xi32>
    %cst_21 = arith.constant 0.000000e+00 : f32
    %67 = vector.broadcast %cst_21 : f32 to vector<16x128xf32>
    %68 = arith.select %66, %23, %67 : vector<16x128xi1>, vector<16x128xf32>
    %cst_22 = arith.constant dense<0.000000e+00> : vector<16xf32>
    %69 = vector.multi_reduction <add>, %68, %cst_22 [1] : vector<16x128xf32> to vector<16xf32>
    %70 = vector.shape_cast %69 : vector<16xf32> to vector<16x1xf32>
    %c0_i32_23 = arith.constant 0 : i32
    %71 = vector.broadcast %c0_i32_23 : i32 to vector<16x1xi32>
    %72 = arith.cmpi ne, %55, %71 : vector<16x1xi32>
    %73 = arith.extui %72 : vector<16x1xi1> to vector<16x1xi32>
    %74 = arith.sitofp %73 : vector<16x1xi32> to vector<16x1xf32>
    %75 = arith.subf %64, %70 : vector<16x1xf32>
    %76 = arith.mulf %75, %74 : vector<16x1xf32>
    %77 = vector.shape_cast %76 : vector<16x1xf32> to vector<1x16x1xf32>
    %cst_24 = arith.constant dense<0.000000e+00> : vector<1xf32>
    %78 = vector.multi_reduction <add>, %77, %cst_24 [1, 2] : vector<1x16x1xf32> to vector<1xf32>
    %79 = vector.shape_cast %78 : vector<1xf32> to vector<1x1x1xf32>
    %80 = vector.extract %79[0, 0, 0] : f32 from vector<1x1x1xf32>
    %81 = vector.shape_cast %74 : vector<16x1xf32> to vector<1x16x1xf32>
    %cst_25 = arith.constant dense<0.000000e+00> : vector<1xf32>
    %82 = vector.multi_reduction <add>, %81, %cst_25 [1, 2] : vector<1x16x1xf32> to vector<1xf32>
    %83 = vector.shape_cast %82 : vector<1xf32> to vector<1x1x1xf32>
    %84 = vector.extract %83[0, 0, 0] : f32 from vector<1x1x1xf32>
    %cst_26 = arith.constant 1.000000e+00 : f32
    %85 = arith.maximumf %84, %cst_26 : f32
    %86 = arith.divf %80, %85 : f32
    %c0_27 = arith.constant 0 : index
    %c0_28 = arith.constant 0 : index
    %87 = memref.load %arg6[%c0_27, %c0_28] : memref<1x1xf32, #tpu.memory_space<smem>>
    memref.store %86, %arg6[%c0_27, %c0_28] : memref<1x1xf32, #tpu.memory_space<smem>>
    return
  }
}

</mosaic_0001>

<bundles_post_ra>
// kernel: editor_forward.1
= control target key start
LH: loop header
LB: loop body
LE: loop exit
PB: predicated region body
PF: predicated region fallthrough
CT: control target
= control target key end

     0   :  { %12 = vsyncpa [#allocation3], 0  ;;  %s868_s0 = inlined_call_operand.vmem [shape: s32[16,1], index: 0, kind: input, shape index: {}]   ;;  %s869_s1 = inlined_call_operand.vmem [shape: s32[1,16], index: 1, kind: input, shape index: {}]   ;;  %s870_s2 = inlined_call_operand.hbm [shape: bf16[128,256], index: 2, kind: input, shape index: {}]   ;;  %s871_s3 = inlined_call_operand.vmem [shape: f32[1,256], index: 3, kind: input, shape index: {}]   ;;  %s872_s4 = inlined_call_operand.hbm [shape: bf16[128,128], index: 4, kind: input, shape index: {}]   ;;  %s873_s5 = inlined_call_operand.hbm [shape: f32[16,128], index: 5, kind: output, shape index: {0}]   ;;  %s874_s6 = inlined_call_operand.hbm [shape: f32[1,1], index: 6, kind: output, shape index: {1}]  }
   0x1   :  { %13 = vsyncpa [#allocation7], 0 }
   0x2   :  { %14 = vsyncpa [#allocation4], 0 }
   0x3   :  { %15 = vsyncpa [#allocation5], 0  ;;  %s731_s21 = smov [#allocation2]   ;;  %s647_s25 = scalar_lea.hbm %s870_s2, 2048 }
   0x4   :  { %s25_s22 = sshll.u32 %s731_s21, 4  ;;  %p648_p0 = scmp.ne.s32.totalorder %s870_s2, %s647_s25  ;;  %s26_s22 = int_to_ptr.vmem [resolvable:$true] %s25_s22 }
   0x5   :  { %p651_p1 = scmp.lt.u32.totalorder %s647_s25, %s870_s2 }
   0x7   :  { %p653_p2 = pnand %p651_p1, %p648_p0 }
   0x9   :  { %656 = shalt.err (!%p653_p2)
}
   0xa   :  { %s657_s30 = scalar_lea.vmem %s26_s22, 2048  ;;  %p662_p4 = scmp.lt.s32.totalorder %s26_s22, %s26_s22 }
   0xb   :  { %p658_p3 = scmp.ne.s32.totalorder %s26_s22, %s657_s30  ;;  %p663_p5 = scmp.lt.s32.totalorder %s657_s30, %s657_s30 }
   0xd   :  { %p664_p6 = por %p663_p5, %p662_p4 }
   0xf   :  { %p665_p7 = pnand %p664_p6, %p658_p3 }
  0x11   :  { %668 = shalt.err (!%p665_p7)
}
  0x12   :  { %s732_s7 = smov 128   ;;  %s733_s8 = smov 8  }
  0x13   :  { %31 = dma.hbm_to_vmem [thread:$0]  %s870_s2, 2048, %s26_s22, [#allocation3], %s732_s7, %s732_s7, %s733_s8  }
  0x14   :  { %s734_s11 = smov [#allocation6]   ;;  %s669_s15 = scalar_lea.hbm %s872_s4, 1024 }
  0x15   :  { %s39_s12 = sshll.u32 %s734_s11, 4  ;;  %p670_p8 = scmp.ne.s32.totalorder %s872_s4, %s669_s15  ;;  %s40_s12 = int_to_ptr.vmem [resolvable:$true] %s39_s12 }
  0x16   :  { %p673_p9 = scmp.lt.u32.totalorder %s669_s15, %s872_s4 }
  0x18   :  { %p675_p10 = pnand %p673_p9, %p670_p8 }
  0x1a   :  { %678 = shalt.err (!%p675_p10)
}
  0x1b   :  { %s679_s20 = scalar_lea.vmem %s40_s12, 1024  ;;  %p684_p12 = scmp.lt.s32.totalorder %s40_s12, %s40_s12 }
  0x1c   :  { %p680_p11 = scmp.ne.s32.totalorder %s40_s12, %s679_s20  ;;  %p685_p13 = scmp.lt.s32.totalorder %s679_s20, %s679_s20 }
  0x1e   :  { %p686_p0 = por %p685_p13, %p684_p12 }
  0x20   :  { %p687_p1 = pnand %p686_p0, %p680_p11 }
  0x22   :  { %690 = shalt.err (!%p687_p1)
}
  0x23   :  { %s735_s2 = smov 64   ;;  %s736_s21 = smov 4  }
  0x24   :  { %45 = dma.hbm_to_vmem [thread:$0]  %s872_s4, 1024, %s40_s12, [#allocation7], %s735_s2, %s735_s2, %s736_s21  }
  0x25   :  { %723 = dma.done.wait [#allocation3], 2048  }
  0x26   :  { %724 = vsyncadd [#allocation3], 4294965248 }
  0x27   :  { %725 = dma.done.wait [#allocation7], 1024  }
  0x28   :  { %726 = vsyncadd [#allocation7], 4294966272  ;;  %v737_v0 = vmov 0   ;;  %v53_v1 = vld [vmem:[%s868_s0] sm:$0xff]  ;;  %v54_v2 = vld [vmem:[%s868_s0 + $0x8] sm:$0xff]  ;;  %v55_v19 = vlaneseq  ;;  %v739_v25 = vmov 0.0  }
  0x29   :  { %596 = vset.pattern.permute.xlu0 %v737_v0  ;;  %210 = vmatprep.mubr.bf16.mxu0 %v737_v0  ;;  %v597_v3 = vld [vmem:[#allocation2 + $0x4] ss:$8 sps:$4 sm:$0xff]   ;;  %v599_v4 = vld [vmem:[#allocation2] ss:$8 sps:$4 sm:$0xff]   ;;  %v600_v5 = vld [vmem:[#allocation2 + $0x14] ss:$8 sps:$4 sm:$0xff]  }
  0x2a   :  { %58 = vperm.xlu0 %596, %v53_v1   ;;  %178 = vmatprep.subr.bf16.mxu0 %v597_v3  ;;  %v602_v6 = vld [vmem:[#allocation2 + $0x10] ss:$8 sps:$4 sm:$0xff]   ;;  %v603_v7 = vld [vmem:[#allocation2 + $0x24] ss:$8 sps:$4 sm:$0xff]   ;;  %v605_v8 = vld [vmem:[#allocation2 + $0x20] ss:$8 sps:$4 sm:$0xff]  }
  0x2b   :  { %179 = vmatpush1.bf16.msra.mxu0 %v599_v4  ;;  %v606_v9 = vld [vmem:[#allocation2 + $0x34] ss:$8 sps:$4 sm:$0xff]   ;;  %v608_v10 = vld [vmem:[#allocation2 + $0x30] ss:$8 sps:$4 sm:$0xff]   ;;  %v609_v11 = vld [vmem:[#allocation2 + $0x44] ss:$8 sps:$4 sm:$0xff]   ;;  %557 = vmatprep.subr.bf16.mxu1 %v739_v25 }
  0x2c   :  { %180 = vmatprep.subr.bf16.mxu0 %v600_v5  ;;  %v611_v12 = vld [vmem:[#allocation2 + $0x40] ss:$8 sps:$4 sm:$0xff]   ;;  %v612_v13 = vld [vmem:[#allocation2 + $0x54] ss:$8 sps:$4 sm:$0xff]   ;;  %v614_v14 = vld [vmem:[#allocation2 + $0x50] ss:$8 sps:$4 sm:$0xff]  }
  0x2d   :  { %v615_v15 = vld [vmem:[#allocation2 + $0x64] ss:$8 sps:$4 sm:$0xff]   ;;  %v617_v16 = vld [vmem:[#allocation2 + $0x60] ss:$8 sps:$4 sm:$0xff]   ;;  %v618_v17 = vld [vmem:[#allocation2 + $0x74] ss:$8 sps:$4 sm:$0xff]  }
  0x2e   :  { %61 = vperm.xlu0 %596, %v54_v2   ;;  %v620_v18 = vld [vmem:[#allocation2 + $0x70] ss:$8 sps:$4 sm:$0xff]   ;;  %v812_v21 = vand.u32 127, %v55_v19  ;;  %v738_v23 = vmov 1.0|1.0   ;;  %v621_v24 = vld [vmem:[#allocation6] sm:$0xff]  }
  0x2f   :  { %181 = vmatpush1.bf16.msra.mxu0 %v602_v6  ;;  %558 = vmatpush3.bf16.msra.mxu1 %v621_v24  ;;  %v622_v26 = vld [vmem:[#allocation6 + $0x8] sm:$0xff]   ;;  %v623_v27 = vld [vmem:[#allocation6 + $0x10] sm:$0xff]   ;;  %v624_v28 = vld [vmem:[#allocation6 + $0x18] sm:$0xff]   ;;  %vm740_vm3 = vmmov 0   ;;  %v89_v33 = vshrl.u32 %v55_v19, 7  ;;  %vm387_vm7 = vcmask 130048  }
  0x30   :  { %182 = vmatprep.subr.bf16.mxu0 %v603_v7  ;;  %559 = vmatprep.subr.bf16.mxu1 %v739_v25  ;;  %v625_v29 = vld [vmem:[#allocation6 + $0x20] sm:$0xff]   ;;  %v626_v30 = vld [vmem:[#allocation6 + $0x28] sm:$0xff]   ;;  %v627_v31 = vld [vmem:[#allocation6 + $0x30] sm:$0xff]   ;;  %vm452_vm12 = vcmask 7168  }
  0x31   :  { %v628_v32 = vld [vmem:[#allocation6 + $0x38] sm:$0xff]   ;;  %573 = vmatprep.mubr.msk.bf16.mxu1 %vm740_vm3, %v739_v25  ;;  %v90_v34 = vsub.s32 0, %v89_v33  ;;  %v86_v35 = vld [vmem:[%s871_s3] sm:$0x3]  ;;  %v94_v49 = vsub.s32 1, %v89_v33  ;;  %v352_v60 = vadd.s32 8, %v89_v33 }
  0x32   :  { %v353_v63 = vadd.s32 1, %v89_v33  ;;  %v361_v0 = vand.u32 7, %v89_v33  ;;  %v545_v1 = vld [vmem:[%s869_s1] ss:$0 sm:$0xff]  ;;  %s741_s1 = smov [#allocation8]  }
  0x33   :  { %183 = vmatpush1.bf16.msra.mxu0 %v605_v8  ;;  %560 = vmatpush3.bf16.msra.mxu1 %v622_v26  ;;  %v91_v36 = vrot.slane %v86_v35, %v90_v34  ;;  %v95_v50 = vrot.slane %v86_v35, %v94_v49  ;;  %v354_v61 = vadd.s32 1, %v352_v60  ;;  %v368_v62 = vand.u32 7, %v352_v60  ;;  %s489_s29 = sshll.u32 %s741_s1, 4  ;;  %s490_s29 = int_to_ptr.vmem [resolvable:$true] %s489_s29 }
  0x34   :  { %184 = vmatprep.subr.bf16.mxu0 %v606_v9  ;;  %561 = vmatprep.subr.bf16.mxu1 %v739_v25  ;;  %vm355_vm8 = vcmp.eq.s32.totalorder %v812_v21, %v353_v63  ;;  %vm381_vm9 = vcmp.ne.s32.totalorder %v361_v0, 7  ;;  %s691_s30 = scalar_lea.vmem %s490_s29, 256  ;;  %p696_p3 = scmp.lt.s32.totalorder %s490_s29, %s490_s29 }
  0x35   :  { %vm356_vm4 = vcmp.eq.s32.totalorder %v812_v21, %v354_v61  ;;  %vm382_vm5 = vcmp.ne.s32.totalorder %v368_v62, 7  ;;  %vm383_vm10 = vmand %vm355_vm8, %vm381_vm9  ;;  %p692_p2 = scmp.ne.s32.totalorder %s490_s29, %s691_s30  ;;  %p697_p4 = scmp.lt.s32.totalorder %s691_s30, %s691_s30 }
  0x36   :  { %vm384_vm6 = vmand %vm356_vm4, %vm382_vm5  ;;  %v385_v4 = vsel %vm383_vm10, %v545_v1, 0 }
  0x37   :  { %185 = vmatpush1.bf16.msra.mxu0 %v608_v10  ;;  %562 = vmatpush3.bf16.msra.mxu1 %v623_v27  ;;  %v386_v2 = vsel %vm384_vm6, %v545_v1, 0  ;;  %v388_v5 = vsel %vm387_vm7, %v385_v4, 0  ;;  %p698_p5 = por %p697_p4, %p696_p3 }
  0x38   :  { %186 = vmatprep.subr.bf16.mxu0 %v609_v11  ;;  %563 = vmatprep.subr.bf16.mxu1 %v739_v25  ;;  %v401_v3 = vsel %vm387_vm7, %v386_v2, 0  ;;  %v390_v6 = vshrl.u32 %v388_v5, 16 }
  0x39   :  { %v403_v10 = vshrl.u32 %v401_v3, 16  ;;  %p699_p6 = pnand %p698_p5, %p692_p2 }
  0x3a   :  { %v392_v7 = vcvt.s32.f32 %v390_v6 }
  0x3b   :  { %187 = vmatpush1.bf16.msra.mxu0 %v611_v12  ;;  %564 = vmatpush3.bf16.msra.mxu1 %v624_v28 }
  0x3c   :  { %188 = vmatprep.subr.bf16.mxu0 %v612_v13  ;;  %565 = vmatprep.subr.bf16.mxu1 %v739_v25  ;;  %v405_v13 = vcvt.s32.f32 %v403_v10 }
  0x3f   :  { %189 = vmatpush1.bf16.msra.mxu0 %v614_v14  ;;  %566 = vmatpush3.bf16.msra.mxu1 %v625_v29  ;;  %v389_v14 = vand.u32 65535, %v388_v5 }
  0x40   :  { %190 = vmatprep.subr.bf16.mxu0 %v615_v15  ;;  %567 = vmatprep.subr.bf16.mxu1 %v739_v25 }
  0x41   :  { %v391_v15 = vcvt.s32.f32 %v389_v14 }
  0x43   :  { %191 = vmatpush1.bf16.msra.mxu0 %v617_v16  ;;  %568 = vmatpush3.bf16.msra.mxu1 %v626_v30  ;;  %v402_v16 = vand.u32 65535, %v401_v3 }
  0x44   :  { %192 = vmatprep.subr.bf16.mxu0 %v618_v17  ;;  %569 = vmatprep.subr.bf16.mxu1 %v739_v25 }
  0x45   :  { %v404_v17 = vcvt.s32.f32 %v402_v16 }
  0x47   :  { %193 = vmatpush1.bf16.msra.mxu0 %v620_v18  ;;  %570 = vmatpush3.bf16.msra.mxu1 %v627_v31 }
  0x48   :  { %571 = vmatprep.subr.bf16.mxu1 %v739_v25 }
  0x4b   :  { %572 = vmatpush3.bf16.msra.mxu1 %v628_v32 }
  0x4d   :  { %395 = vadd.xlane.f32.xlu0 %v392_v7 }
  0xa9   :  { %v59_v20 = vpop.permute.xlu0 %58 }
  0xaa   :  { %vm63_vm0 = vcmp.eq.s32.totalorder %v812_v21, %v59_v20 }
  0xad   :  { %v62_v22 = vpop.permute.xlu0 %61 }
  0xae   :  { %vm64_vm1 = vcmp.eq.s32.totalorder %v812_v21, %v62_v22 }
  0xaf   :  { %vm533_vm2 = vmpackc.low %vm64_vm1, %vm63_vm0 }
  0xb0   :  { %534 = vmatmul.mubr.msk.bf16.vlgmr.msra.gmra.mrb[0].mxu0 %vm533_vm2, %v738_v23 }
  0xda   :  { %v396_v23 = vpop.xlane.xlu0 %395 }
  0xdb   :  { %v398_v27 = vcvt.f32.s32 %v396_v23 }
  0xdd   :  { %v399_v30 = vshll.u32 %v398_v27, 16 }
 0x183   :  { %v212_v37 = vpop.f32.mrb[0].mxu0 }
 0x184   :  { %v213_v38 = vadd.f32 %v212_v37, %v91_v36  ;;  %v214_v39 = vpop.f32.mrb[1].mxu0 }
 0x185   :  { %v216_v40 = vpop.f32.mrb[2].mxu0  ;;  %v215_v53 = vadd.f32 %v214_v39, %v95_v50 }
 0x186   :  { %v535_v41 = vmul.f32 -1.442695, %v213_v38  ;;  %v217_v42 = vadd.f32 %v216_v40, %v91_v36  ;;  %v218_v43 = vpop.f32.mrb[3].mxu0 }
 0x187   :  { %v219_v57 = vadd.f32 %v218_v43, %v95_v50 }
 0x188   :  { %629 = vpow2.f32 %v535_v41  ;;  %v536_v44 = vmul.f32 -1.442695, %v217_v42 }
 0x18a   :  { %631 = vpow2.f32 %v536_v44 }
 0x192   :  { %v630_v45 = vpop.eup %629 }
 0x193   :  { %v227_v46 = vadd.f32 1.0, %v630_v45 }
 0x194   :  { %v632_v47 = vpop.eup %631 }
 0x195   :  { %633 = vrcp.f32 %v227_v46  ;;  %v228_v48 = vadd.f32 1.0, %v632_v47 }
 0x197   :  { %635 = vrcp.f32 %v228_v48 }
 0x19f   :  { %v634_v51 = vpop.eup %633 }
 0x1a0   :  { %v233_v52 = vmul.f32 %v634_v51, %v213_v38 }
 0x1a1   :  { %v636_v54 = vpop.eup %635 }
 0x1a2   :  { %v235_v55 = vmul.f32 %v233_v52, %v215_v53  ;;  %v234_v56 = vmul.f32 %v636_v54, %v217_v42 }
 0x1a4   :  { %v236_v58 = vmul.f32 %v234_v56, %v219_v57 }
 0x1a6   :  { %v237_v59 = vpack.c.bf16 %v236_v58, %v235_v55 }
 0x1a8   :  { %574 = vmatmul.mubr.bf16.vlgmr.msra.gmra.mrb[0].mxu1 %v237_v59 }
 0x27b   :  { %v336_v8 = vpop.f32.mrb[0].mxu1 }
 0x27c   :  { %343 = vst [vmem:[#allocation8] sm:$0xff] %v336_v8  ;;  %414 = vmax.xlane.f32.xlu1 %v336_v8  ;;  %v575_v9 = vpop.f32.mrb[1].mxu1 }
 0x27d   :  { %v339_v11 = vpop.f32.mrb[2].mxu1 }
 0x27e   :  { %344 = vst [vmem:[#allocation8 + $0x8] sm:$0xff] %v339_v11  ;;  %v576_v12 = vpop.f32.mrb[3].mxu1 }
 0x280   :  { %416 = vmax.xlane.f32.xlu1 %v339_v11 }
 0x284   :  { %408 = vadd.xlane.f32.xlu1 %v405_v13 }
 0x288   :  { %393 = vadd.xlane.f32.xlu1 %v391_v15 }
 0x28c   :  { %406 = vadd.xlane.f32.xlu1 %v404_v17 }
 0x309   :  { %v415_v18 = vpop.xlane.xlu1 %414 }
 0x30a   :  { %v418_v19 = vsub.f32 %v336_v8, %v415_v18 }
 0x30c   :  { %v420_v20 = vmul.f32 1.442695, %v418_v19 }
 0x30d   :  { %v417_v22 = vpop.xlane.xlu1 %416 }
 0x30e   :  { %637 = vpow2.f32 %v420_v20  ;;  %v419_v24 = vsub.f32 %v339_v11, %v417_v22 }
 0x310   :  { %v422_v26 = vmul.f32 1.442695, %v419_v24 }
 0x311   :  { %v409_v28 = vpop.xlane.xlu1 %408 }
 0x312   :  { %639 = vpow2.f32 %v422_v26  ;;  %v411_v29 = vcvt.f32.s32 %v409_v28 }
 0x314   :  { %v412_v34 = vshll.u32 %v411_v29, 16 }
 0x315   :  { %v394_v31 = vpop.xlane.xlu1 %393 }
 0x316   :  { %v397_v32 = vcvt.f32.s32 %v394_v31 }
 0x318   :  { %v638_v33 = vpop.eup %637  ;;  %v400_v35 = vadd.s32 %v399_v30, %v397_v32 }
 0x319   :  { %424 = vadd.xlane.f32.xlu1 %v638_v33  ;;  %v407_v36 = vpop.xlane.xlu1 %406 }
 0x31a   :  { %v410_v37 = vcvt.f32.s32 %v407_v36  ;;  %vm442_vm11 = vcmp.ne.s32.totalorder %v400_v35, 0  ;;  %vm434_vm13 = vcmp.eq.s32.totalorder %v812_v21, %v400_v35 }
 0x31b   :  { %v546_v38 = vsel %vm442_vm11, 1.0, %v739_v25  ;;  %v436_v43 = vsel %vm434_vm13, %v336_v8, 0.0 }
 0x31c   :  { %v640_v39 = vpop.eup %639  ;;  %v413_v40 = vadd.s32 %v412_v34, %v410_v37  ;;  %v465_v41 = vsel %vm452_vm12, %v546_v38, 0.0 }
 0x31d   :  { %426 = vadd.xlane.f32.xlu1 %v640_v39 }
 0x31e   :  { %vm443_vm14 = vcmp.ne.s32.totalorder %v413_v40, 0  ;;  %vm435_vm15 = vcmp.eq.s32.totalorder %v812_v21, %v413_v40 }
 0x31f   :  { %v547_v42 = vsel %vm443_vm14, 1.0, %v739_v25  ;;  %v437_v46 = vsel %vm435_vm15, %v339_v11, 0.0 }
 0x320   :  { %v466_v44 = vsel %vm452_vm12, %v547_v42, 0.0 }
 0x321   :  { %438 = vadd.xlane.f32.xlu1 %v436_v43  ;;  %v467_v45 = vadd.f32 %v466_v44, %v465_v41 }
 0x323   :  { %468 = vadd.xlane.f32.xlu0 %v467_v45 }
 0x325   :  { %440 = vadd.xlane.f32.xlu1 %v437_v46 }
 0x3a6   :  { %v425_v47 = vpop.xlane.xlu1 %424 }
 0x3a7   :  { %641 = vlog2.f32 %v425_v47 }
 0x3aa   :  { %v427_v48 = vpop.xlane.xlu1 %426 }
 0x3ab   :  { %643 = vlog2.f32 %v427_v48 }
 0x3ae   :  { %v439_v51 = vpop.xlane.xlu1 %438 }
 0x3b0   :  { %v469_v62 = vpop.xlane.xlu0 %468 }
 0x3b1   :  { %v642_v49 = vpop.eup %641  ;;  %v470_v63 = vrot.slane %v469_v62, 4 }
 0x3b2   :  { %v429_v50 = vmul.f32 0.6931472, %v642_v49  ;;  %v441_v56 = vpop.xlane.xlu1 %440 }
 0x3b3   :  { %v471_v0 = vadd.f32 %v470_v63, %v469_v62 }
 0x3b4   :  { %v432_v52 = vadd.f32 %v429_v50, %v415_v18 }
 0x3b5   :  { %v644_v53 = vpop.eup %643  ;;  %v472_v1 = vrot.slane %v471_v0, 2 }
 0x3b6   :  { %v431_v25 = vmul.f32 0.6931472, %v644_v53  ;;  %v448_v54 = vsub.f32 %v432_v52, %v439_v51 }
 0x3b8   :  { %v433_v55 = vadd.f32 %v431_v25, %v417_v22  ;;  %v450_v57 = vmul.f32 %v546_v38, %v448_v54 }
 0x3ba   :  { %v449_v58 = vsub.f32 %v433_v55, %v441_v56  ;;  %v453_v21 = vsel %vm452_vm12, %v450_v57, 0.0 }
 0x3bc   :  { %v451_v59 = vmul.f32 %v547_v42, %v449_v58 }
 0x3be   :  { %v454_v60 = vsel %vm452_vm12, %v451_v59, 0.0 }
 0x3bf   :  { %v455_v61 = vadd.f32 %v454_v60, %v453_v21 }
 0x3c1   :  { %456 = vadd.xlane.f32.xlu1 %v455_v61 }
 0x44e   :  { %v457_v2 = vpop.xlane.xlu1 %456 }
 0x44f   :  { %v458_v3 = vrot.slane %v457_v2, 4 }
 0x450   :  { %702 = shalt.err (!%p699_p6)
}
 0x451   :  { %s703_s11 = scalar_lea.hbm %s873_s5, 256 }
 0x452   :  { %p704_p7 = scmp.ne.s32.totalorder %s873_s5, %s703_s11  ;;  %p707_p8 = scmp.lt.u32.totalorder %s703_s11, %s873_s5 }
 0x454   :  { %p709_p9 = pnand %p707_p8, %p704_p7 }
 0x456   :  { %712 = shalt.err (!%p709_p9)
}
 0x457   :  { %495 = dma.vmem_to_hbm [thread:$0]  %s490_s29, 256, %s873_s5, [#allocation4], %s732_s7, %s732_s7, %s733_s8   ;;  %v459_v4 = vadd.f32 %v458_v3, %v457_v2  ;;  %v473_v5 = vadd.f32 %v472_v1, %v471_v0 }
 0x458   :  { %s742_s20 = smov 1.0   ;;  %s713_s22 = scalar_lea.hbm %s874_s6, 16 }
 0x459   :  { %v460_v6 = vrot.slane %v459_v4, 2  ;;  %v474_v8 = vrot.slane %v473_v5, 1  ;;  %p714_p10 = scmp.ne.s32.totalorder %s874_s6, %s713_s22  ;;  %p717_p11 = scmp.lt.u32.totalorder %s713_s22, %s874_s6 }
 0x45b   :  { %v461_v7 = vadd.f32 %v460_v6, %v459_v4  ;;  %v475_v11 = vadd.f32 %v474_v8, %v473_v5  ;;  %p719_p12 = pnand %p717_p11, %p714_p10 }
 0x45d   :  { %v462_v9 = vrot.slane %v461_v7, 1 }
 0x45f   :  { %v463_v10 = vadd.f32 %v462_v9, %v461_v7 }
 0x461   :  { %577 = vpush %v463_v10 }
 0x462   :  { %579 = vpush %v475_v11 }
 0x492   :  { %s578_s18 = spop %577 }
 0x493   :  { %s580_s19 = spop %579 }
 0x494   :  { %s477_s2 = smax.f32 %s742_s20, %s580_s19 }
 0x495   :  { %v478_v12 = vstv %s477_s2 }
 0x496   :  { %645 = vrcp.f32 %v478_v12 }
 0x4a0   :  { %v646_v13 = vpop.eup %645 }
 0x4a1   :  { %581 = vpush %v646_v13 }
 0x4d2   :  { %s582_s21 = spop %581 }
 0x4d3   :  { %s481_s5 = smul.f32 %s582_s21, %s578_s18 }
 0x4d5   :  { %483 = sst [smem:[#allocation9]] %s481_s5 }
 0x4d6   :  { %722 = shalt.err (!%p719_p12)
}
 0x4d7   :  { %s743_s27 = smov [#allocation9]  }
 0x4d8   :  { %503 = dma.smem_to_hbm %s743_s27, 16, %s874_s6, [#allocation5]  }
 0x4d9   :  { %727 = dma.done.wait [#allocation4], 256  }
 0x4da   :  { %728 = vsyncadd [#allocation4], 4294967040 }
 0x4db   :  { %729 = dma.done.wait [#allocation5], 16  }
 0x4dc   :  { %730 = vsyncadd [#allocation5], 4294967280 }
 0x4dd   :  { %510 = sfence }
 0x4de   :  { %511 = vsyncpa [#allocation3], 1 }
 0x4df   :  { %512 = vsyncpa [#allocation7], 1 }
 0x4e0   :  { %513 = vsyncpa [#allocation4], 1 }
 0x4e1   :  { %514 = vsyncpa [#allocation5], 1 }

</bundles_post_ra>
